<compile_context>
chip_gen: v5e
topology: v5e:2x2
jax: 0.10.0
libtpu: 0.0.40
codegen_flags: <defaults>
</compile_context>

<pallas_src>
import functools

import jax
import jax.numpy as jnp
from jax.experimental import pallas as pl
from jax.experimental.pallas import tpu as pltpu


def _round_up(x, m):
    return ((x + m - 1) // m) * m


def _pick_kv_tile(s, max_tile=512):
    """kv tile: multiple of 128 (lane dim of scores / K-dim of P@V)."""
    s128 = _round_up(max(s, 1), 128)
    t = min(max_tile, s128)
    t -= t % 128
    while s128 % t:
        t -= 128
    return t


def _pick_q_tile(t, max_tile=512):
    if t <= max_tile:
        return t
    for cand in range(max_tile - max_tile % 8, 7, -8):
        if t % cand == 0:
            return cand
    return t  # fallback: full T as a single tile


# ---------------------------------------------------------------------------
# Kernel: one (batch, q-tile, kv-tile) grid step of a single attention head.
# ---------------------------------------------------------------------------
def _attention_head_kernel(q_ref, kv_ref, wk_ref, wv_ref, o_ref,
                           m_sc, l_sc, acc_sc, *,
                           causal, q_tile, kv_tile, seq_kv, mask_pad):
    qi = pl.program_id(1)
    ki = pl.program_id(2)

    # First kv step for this (batch, q-tile): init online-softmax state.
    @pl.when(ki == 0)
    def _():
        m_sc[...] = jnp.full(m_sc.shape, -1e30, jnp.float32)
        l_sc[...] = jnp.zeros(l_sc.shape, jnp.float32)
        acc_sc[...] = jnp.zeros(acc_sc.shape, jnp.float32)

    def update():
        kv_blk = kv_ref[0]                        # (kv_tile, C) compute dtype
        cdt = kv_blk.dtype
        # Two separate K/V projections: avoids slicing a fused (S, 2H) result
        # inside an (8,128) tile when H % 128 != 0.  f32 accumulation on MXU.
        k = jnp.dot(kv_blk, wk_ref[...],
                    preferred_element_type=jnp.float32).astype(cdt)
        v = jnp.dot(kv_blk, wv_ref[...],
                    preferred_element_type=jnp.float32).astype(cdt)

        # Scores: contract on H without materializing k.T (XLU stays idle).
        scores = jax.lax.dot_general(
            q_ref[0], k, dimension_numbers=(((1,), (1,)), ((), ())),
            preferred_element_type=jnp.float32)   # (q_tile, kv_tile) f32

        if causal or mask_pad:
            row = (jax.lax.broadcasted_iota(jnp.int32, scores.shape, 0)
                   + qi * q_tile)
            col = (jax.lax.broadcasted_iota(jnp.int32, scores.shape, 1)
                   + ki * kv_tile)
            pred = None
            if causal:
                pred = col <= row
            if mask_pad:
                pad_ok = col < seq_kv
                pred = pad_ok if pred is None else jnp.logical_and(pred, pad_ok)
            # Large finite negative (not -inf): masked rows/tiles stay NaN-free.
            scores = jnp.where(pred, scores, -1e30)

        # Online softmax update (f32 on VPU/EUP).
        m_prev = m_sc[...]
        m_new = jnp.maximum(m_prev, jnp.max(scores, axis=-1, keepdims=True))
        alpha = jnp.exp(m_prev - m_new)
        p = jnp.exp(scores - m_new)               # (q_tile, kv_tile)
        l_sc[...] = alpha * l_sc[...] + jnp.sum(p, axis=-1, keepdims=True)
        acc_sc[...] = alpha * acc_sc[...] + jnp.dot(
            p.astype(cdt), v, preferred_element_type=jnp.float32)
        m_sc[...] = m_new

    if causal:
        # Skip kv tiles that lie entirely above the diagonal for this q tile.
        # kv tile 0 always overlaps (col 0 <= every row), so the online-softmax
        # state is always seeded from a tile with at least one valid column.
        @pl.when(ki * kv_tile <= qi * q_tile + (q_tile - 1))
        def _():
            update()
    else:
        update()

    # TODO(synk): dropout on the attention weights omitted (eval mode).

    # Last kv step: normalize once on the small (q_tile, H) accumulator.
    @pl.when(ki == pl.num_programs(2) - 1)
    def _():
        inv_l = pl.reciprocal(l_sc[...], approx=False)   # exact; runs once
        o_ref[0] = (acc_sc[...] * inv_l).astype(o_ref.dtype)


# ---------------------------------------------------------------------------
# Wrapper: AttentionHead.forward
# ---------------------------------------------------------------------------
def attention_head(data, wq, wk, wv, crossData=None, *, causal=False,
                   q_tile=None, kv_tile=None, compute_dtype=jnp.bfloat16):
    B, T, C = data.shape
    kv = data if crossData is None else crossData
    S = kv.shape[1]
    H = wq.shape[1]
    out_dtype = data.dtype

    # Q projection hoisted to XLA; softmax scale (C**-0.5) folded in, in f32.
    scale = float(C) ** -0.5
    q = jnp.einsum("btc,ch->bth", data.astype(jnp.float32),
                   wq.astype(jnp.float32)) * scale
    q = q.astype(compute_dtype)

    # Lane-dense kv tiles (multiples of 128); pad S and mask padded columns.
    if kv_tile is None:
        kv_tile = _pick_kv_tile(S)
    assert kv_tile % 128 == 0, "kv_tile must be a multiple of 128"
    S_pad = _round_up(S, kv_tile)
    mask_pad = S_pad != S

    if q_tile is None:
        q_tile = _pick_q_tile(T)
    assert T % q_tile == 0 and (q_tile % 8 == 0 or q_tile == T), \
        "q_tile must divide T and be a multiple of 8 (or equal T)"

    kv_c = kv.astype(compute_dtype)
    if mask_pad:
        kv_c = jnp.pad(kv_c, ((0, 0), (0, S_pad - S), (0, 0)))
    wk_c = wk.astype(compute_dtype)
    wv_c = wv.astype(compute_dtype)

    num_q = T // q_tile
    num_kv = S_pad // kv_tile

    kernel = functools.partial(
        _attention_head_kernel, causal=causal, q_tile=q_tile,
        kv_tile=kv_tile, seq_kv=S, mask_pad=mask_pad)

    # Explicit VMEM budget: double-buffered q/kv/out blocks + weights + scratch.
    cbytes = jnp.dtype(compute_dtype).itemsize
    need = (2 * (q_tile * H + kv_tile * C) * cbytes        # q + kv blocks (x2)
            + 2 * q_tile * H * jnp.dtype(out_dtype).itemsize  # out block (x2)
            + 2 * 2 * C * H * cbytes                       # wk, wv (x2 buf)
            + q_tile * (H + 2) * 4)                        # f32 scratch
    vmem_limit = int(min(64 << 20, max(32 << 20, 2 * need)))

    return pl.pallas_call(
        kernel,
        out_shape=jax.ShapeDtypeStruct((B, T, H), out_dtype),
        grid_spec=pltpu.PrefetchScalarGridSpec(
            num_scalar_prefetch=0,
            grid=(B, num_q, num_kv),
            in_specs=[
                pl.BlockSpec((1, q_tile, H), lambda b, qi, ki: (b, qi, 0)),   # q
                pl.BlockSpec((1, kv_tile, C), lambda b, qi, ki: (b, ki, 0)),  # kv
                pl.BlockSpec((C, H), lambda b, qi, ki: (0, 0)),               # Wk
                pl.BlockSpec((C, H), lambda b, qi, ki: (0, 0)),               # Wv
            ],
            out_specs=pl.BlockSpec((1, q_tile, H), lambda b, qi, ki: (b, qi, 0)),
            scratch_shapes=[
                pltpu.VMEM((q_tile, 1), jnp.float32),   # running max
                pltpu.VMEM((q_tile, 1), jnp.float32),   # running denominator
                pltpu.VMEM((q_tile, H), jnp.float32),   # un-normalized P@V
            ]),
        compiler_params=pltpu.CompilerParams(
            dimension_semantics=("parallel", "parallel", "arbitrary"),
            vmem_limit_bytes=vmem_limit),
    )(q, kv_c, wk_c, wv_c)


# ---------------------------------------------------------------------------
# Pure-JAX reference (mirrors the PyTorch forward in eval mode)
# ---------------------------------------------------------------------------
def reference(data, wq, wk, wv, crossData=None, *, causal=False):
    B, T, C = data.shape
    kv = data if crossData is None else crossData
    q = data @ wq
    k = kv @ wk
    v = kv @ wv
    wei = jnp.einsum("btd,bsd->bts", q, k) * (C ** -0.5)
    if causal:
        mask = jnp.tril(jnp.ones((T, kv.shape[1])))
        wei = jnp.where(mask == 0, -jnp.inf, wei)
    wei = jax.nn.softmax(wei, axis=-1)
    return wei @ v


if __name__ == "__main__":
    key = jax.random.PRNGKey(0)
    k1, k2, k3, k4, k5, k6 = jax.random.split(key, 6)

    B, C, H = 2, 32, 16
    wq = jax.random.normal(k1, (C, H), jnp.float32) * 0.1
    wk = jax.random.normal(k2, (C, H), jnp.float32) * 0.1
    wv = jax.random.normal(k3, (C, H), jnp.float32) * 0.1

    # --- Config 1: self-attention, no mask, f32 MXU path (tight check) -------
    T = 8
    data = jax.random.normal(k4, (B, T, C), jnp.float32)
    out = jax.block_until_ready(
        attention_head(data, wq, wk, wv, causal=False,
                       compute_dtype=jnp.float32))
    ref = reference(data, wq, wk, wv, causal=False)
    assert out.shape == (B, T, H)
    assert jnp.allclose(out, ref, atol=2e-3, rtol=2e-3), "mismatch (self, f32)"

    # --- Config 2: causal self-attn, 2 q tiles x 2 kv tiles, bf16 MXU path ---
    T2 = 256
    data2 = jax.random.normal(k5, (B, T2, C), jnp.float32)
    out2 = jax.block_until_ready(
        attention_head(data2, wq, wk, wv, causal=True,
                       q_tile=128, kv_tile=128,
                       compute_dtype=jnp.bfloat16))
    ref2 = reference(data2, wq, wk, wv, causal=True)
    assert out2.shape == (B, T2, H)
    assert jnp.allclose(out2, ref2, atol=2e-2, rtol=2e-2), "mismatch (causal, bf16)"

    # --- Config 3: cross-attention (S != T), padded kv tile, bf16 path -------
    cross = jax.random.normal(k6, (B, 16, C), jnp.float32)
    out3 = jax.block_until_ready(
        attention_head(data, wq, wk, wv, crossData=cross, causal=False,
                       compute_dtype=jnp.bfloat16))
    ref3 = reference(data, wq, wk, wv, crossData=cross, causal=False)
    assert out3.shape == (B, T, H)
    assert jnp.allclose(out3, ref3, atol=2e-2, rtol=2e-2), "mismatch (cross, bf16)"

    print("KERNEL_OK")
</pallas_src>

<mosaic_0001>
module attributes {stable_mosaic.version = 11 : i64} {
  func.func @_attention_head_kernel(%arg0: i32, %arg1: i32, %arg2: i32, %arg3: memref<1x8x16xf32, #tpu.memory_space<vmem>>, %arg4: memref<1x128x32xf32, #tpu.memory_space<vmem>>, %arg5: memref<32x16xf32, #tpu.memory_space<vmem>>, %arg6: memref<32x16xf32, #tpu.memory_space<vmem>>, %arg7: memref<1x8x16xf32, #tpu.memory_space<vmem>>, %arg8: memref<8x1xf32, #tpu.memory_space<vmem>>, %arg9: memref<8x1xf32, #tpu.memory_space<vmem>>, %arg10: memref<8x16xf32, #tpu.memory_space<vmem>>) attributes {dimension_semantics = [#tpu.dimension_semantics<parallel>, #tpu.dimension_semantics<parallel>, #tpu.dimension_semantics<arbitrary>], iteration_bounds = array<i64: 2, 1, 1>, scalar_prefetch = 0 : i64, scratch_operands = 3 : i64, tpu.core_type = #tpu.core_type<tc>, window_params = [{transform_indices = @transform_0, window_bounds = array<i64: 1, 8, 16>}, {transform_indices = @transform_1, window_bounds = array<i64: 1, 128, 32>}, {pipeline_mode = #tpu.pipeline_mode<synchronous>, transform_indices = @transform_2, window_bounds = array<i64: 32, 16>}, {pipeline_mode = #tpu.pipeline_mode<synchronous>, transform_indices = @transform_3, window_bounds = array<i64: 32, 16>}, {transform_indices = @transform_4, window_bounds = array<i64: 1, 8, 16>}]} {
    %c0_i32 = arith.constant 0 : i32
    %0 = arith.cmpi eq, %arg2, %c0_i32 : i32
    %1 = arith.extui %0 : i1 to i32
    %c0_i32_0 = arith.constant 0 : i32
    %2 = arith.cmpi ne, %1, %c0_i32_0 : i32
    scf.if %2 {
      %cst_30 = arith.constant -1.000000e+30 : f32
      %45 = vector.broadcast %cst_30 : f32 to vector<8x1xf32>
      %c0_31 = arith.constant 0 : index
      %c0_32 = arith.constant 0 : index
      %46 = vector.load %arg8[%c0_31, %c0_32] : memref<8x1xf32, #tpu.memory_space<vmem>>, vector<8x1xf32>
      tpu.vector_store %arg8[%c0_31, %c0_32], %45 {strides = array<i32>} : memref<8x1xf32, #tpu.memory_space<vmem>>, vector<8x1xf32>,
      %cst_33 = arith.constant 0.000000e+00 : f32
      %47 = vector.broadcast %cst_33 : f32 to vector<8x1xf32>
      %c0_34 = arith.constant 0 : index
      %c0_35 = arith.constant 0 : index
      %48 = vector.load %arg9[%c0_34, %c0_35] : memref<8x1xf32, #tpu.memory_space<vmem>>, vector<8x1xf32>
      tpu.vector_store %arg9[%c0_34, %c0_35], %47 {strides = array<i32>} : memref<8x1xf32, #tpu.memory_space<vmem>>, vector<8x1xf32>,
      %cst_36 = arith.constant 0.000000e+00 : f32
      %49 = vector.broadcast %cst_36 : f32 to vector<8x16xf32>
      %c0_37 = arith.constant 0 : index
      %c0_38 = arith.constant 0 : index
      %50 = vector.load %arg10[%c0_37, %c0_38] : memref<8x16xf32, #tpu.memory_space<vmem>>, vector<8x16xf32>
      tpu.vector_store %arg10[%c0_37, %c0_38], %49 {strides = array<i32>} : memref<8x16xf32, #tpu.memory_space<vmem>>, vector<8x16xf32>,
    } else {
    }
    %c0 = arith.constant 0 : index
    %c0_1 = arith.constant 0 : index
    %c0_2 = arith.constant 0 : index
    %3 = vector.load %arg4[%c0, %c0_1, %c0_2] : memref<1x128x32xf32, #tpu.memory_space<vmem>>, vector<1x128x32xf32>
    %4 = vector.shape_cast %3 : vector<1x128x32xf32> to vector<128x32xf32>
    %c0_3 = arith.constant 0 : index
    %c0_4 = arith.constant 0 : index
    %5 = vector.load %arg5[%c0_3, %c0_4] : memref<32x16xf32, #tpu.memory_space<vmem>>, vector<32x16xf32>
    %cst = arith.constant dense<0.000000e+00> : vector<128x16xf32>
    %6 = tpu.matmul %4, %5, %cst {dimension_numbers = #tpu.dot_dimension_numbers<[1], [0], [0], [1], [0, 0, 1, 1], [], []>} : vector<128x32xf32>, vector<32x16xf32>, vector<128x16xf32> -> vector<128x16xf32>
    %c0_5 = arith.constant 0 : index
    %c0_6 = arith.constant 0 : index
    %7 = vector.load %arg6[%c0_5, %c0_6] : memref<32x16xf32, #tpu.memory_space<vmem>>, vector<32x16xf32>
    %cst_7 = arith.constant dense<0.000000e+00> : vector<128x16xf32>
    %8 = tpu.matmul %4, %7, %cst_7 {dimension_numbers = #tpu.dot_dimension_numbers<[1], [0], [0], [1], [0, 0, 1, 1], [], []>} : vector<128x32xf32>, vector<32x16xf32>, vector<128x16xf32> -> vector<128x16xf32>
    %c0_8 = arith.constant 0 : index
    %c0_9 = arith.constant 0 : index
    %c0_10 = arith.constant 0 : index
    %9 = vector.load %arg3[%c0_8, %c0_9, %c0_10] : memref<1x8x16xf32, #tpu.memory_space<vmem>>, vector<1x8x16xf32>
    %10 = vector.shape_cast %9 : vector<1x8x16xf32> to vector<8x16xf32>
    %cst_11 = arith.constant dense<0.000000e+00> : vector<8x128xf32>
    %11 = tpu.matmul %10, %6, %cst_11 {dimension_numbers = #tpu.dot_dimension_numbers<[1], [1], [0], [0], [0, 0, 1, 0], [], []>} : vector<8x16xf32>, vector<128x16xf32>, vector<8x128xf32> -> vector<8x128xf32>
    %12 = tpu.iota {dimensions = array<i32: 1>} : vector<8x128xi32>
    %c128_i32 = arith.constant 128 : i32
    %13 = arith.muli %arg2, %c128_i32 : i32
    %14 = vector.broadcast %13 : i32 to vector<8x128xi32>
    %15 = arith.addi %12, %14 : vector<8x128xi32>
    %c8_i32 = arith.constant 8 : i32
    %16 = vector.broadcast %c8_i32 : i32 to vector<8x128xi32>
    %17 = arith.cmpi slt, %15, %16 : vector<8x128xi32>
    %cst_12 = arith.constant -1.000000e+30 : f32
    %18 = vector.broadcast %cst_12 : f32 to vector<8x128xf32>
    %19 = arith.select %17, %11, %18 : vector<8x128xi1>, vector<8x128xf32>
    %c0_13 = arith.constant 0 : index
    %c0_14 = arith.constant 0 : index
    %20 = vector.load %arg8[%c0_13, %c0_14] : memref<8x1xf32, #tpu.memory_space<vmem>>, vector<8x1xf32>
    %cst_15 = arith.constant dense<0xFF800000> : vector<8xf32>
    %21 = vector.multi_reduction <maximumf>, %19, %cst_15 [1] : vector<8x128xf32> to vector<8xf32>
    %22 = vector.shape_cast %21 : vector<8xf32> to vector<8x1xf32>
    %23 = arith.maximumf %20, %22 : vector<8x1xf32>
    %24 = arith.subf %20, %23 : vector<8x1xf32>
    %25 = math.exp %24 : vector<8x1xf32>
    %26 = vector.broadcast %23 : vector<8x1xf32> to vector<8x128xf32>
    %27 = arith.subf %19, %26 : vector<8x128xf32>
    %28 = math.exp %27 : vector<8x128xf32>
    %c0_16 = arith.constant 0 : index
    %c0_17 = arith.constant 0 : index
    %29 = vector.load %arg9[%c0_16, %c0_17] : memref<8x1xf32, #tpu.memory_space<vmem>>, vector<8x1xf32>
    %30 = arith.mulf %25, %29 : vector<8x1xf32>
    %cst_18 = arith.constant dense<0.000000e+00> : vector<8xf32>
    %31 = vector.multi_reduction <add>, %28, %cst_18 [1] : vector<8x128xf32> to vector<8xf32>
    %32 = vector.shape_cast %31 : vector<8xf32> to vector<8x1xf32>
    %33 = arith.addf %30, %32 : vector<8x1xf32>
    %c0_19 = arith.constant 0 : index
    %c0_20 = arith.constant 0 : index
    %34 = vector.load %arg9[%c0_19, %c0_20] : memref<8x1xf32, #tpu.memory_space<vmem>>, vector<8x1xf32>
    tpu.vector_store %arg9[%c0_19, %c0_20], %33 {strides = array<i32>} : memref<8x1xf32, #tpu.memory_space<vmem>>, vector<8x1xf32>,
    %c0_21 = arith.constant 0 : index
    %c0_22 = arith.constant 0 : index
    %35 = vector.load %arg10[%c0_21, %c0_22] : memref<8x16xf32, #tpu.memory_space<vmem>>, vector<8x16xf32>
    %36 = vector.broadcast %25 : vector<8x1xf32> to vector<8x16xf32>
    %37 = arith.mulf %36, %35 : vector<8x16xf32>
    %cst_23 = arith.constant dense<0.000000e+00> : vector<8x16xf32>
    %38 = tpu.matmul %28, %8, %cst_23 {dimension_numbers = #tpu.dot_dimension_numbers<[1], [0], [0], [1], [0, 0, 1, 1], [], []>} : vector<8x128xf32>, vector<128x16xf32>, vector<8x16xf32> -> vector<8x16xf32>
    %39 = arith.addf %37, %38 : vector<8x16xf32>
    %c0_24 = arith.constant 0 : index
    %c0_25 = arith.constant 0 : index
    %40 = vector.load %arg10[%c0_24, %c0_25] : memref<8x16xf32, #tpu.memory_space<vmem>>, vector<8x16xf32>
    tpu.vector_store %arg10[%c0_24, %c0_25], %39 {strides = array<i32>} : memref<8x16xf32, #tpu.memory_space<vmem>>, vector<8x16xf32>,
    %c0_26 = arith.constant 0 : index
    %c0_27 = arith.constant 0 : index
    %41 = vector.load %arg8[%c0_26, %c0_27] : memref<8x1xf32, #tpu.memory_space<vmem>>, vector<8x1xf32>
    tpu.vector_store %arg8[%c0_26, %c0_27], %23 {strides = array<i32>} : memref<8x1xf32, #tpu.memory_space<vmem>>, vector<8x1xf32>,
    %c0_i32_28 = arith.constant 0 : i32
    %42 = arith.cmpi eq, %arg2, %c0_i32_28 : i32
    %43 = arith.extui %42 : i1 to i32
    %c0_i32_29 = arith.constant 0 : i32
    %44 = arith.cmpi ne, %43, %c0_i32_29 : i32
    scf.if %44 {
      %c0_30 = arith.constant 0 : index
      %c0_31 = arith.constant 0 : index
      %45 = vector.load %arg9[%c0_30, %c0_31] : memref<8x1xf32, #tpu.memory_space<vmem>>, vector<8x1xf32>
      %46 = tpu.reciprocal %45 : vector<8x1xf32> -> vector<8x1xf32>
      %c0_32 = arith.constant 0 : index
      %c0_33 = arith.constant 0 : index
      %47 = vector.load %arg10[%c0_32, %c0_33] : memref<8x16xf32, #tpu.memory_space<vmem>>, vector<8x16xf32>
      %48 = vector.broadcast %46 : vector<8x1xf32> to vector<8x16xf32>
      %49 = arith.mulf %47, %48 : vector<8x16xf32>
      %c0_34 = arith.constant 0 : index
      %c0_35 = arith.constant 0 : index
      %c0_36 = arith.constant 0 : index
      %50 = vector.load %arg7[%c0_34, %c0_35, %c0_36] : memref<1x8x16xf32, #tpu.memory_space<vmem>>, vector<1x8x16xf32>
      %51 = vector.shape_cast %50 : vector<1x8x16xf32> to vector<8x16xf32>
      %52 = vector.shape_cast %49 : vector<8x16xf32> to vector<1x8x16xf32>
      tpu.vector_store %arg7[%c0_34, %c0_35, %c0_36], %52 {strides = array<i32>} : memref<1x8x16xf32, #tpu.memory_space<vmem>>, vector<1x8x16xf32>,
    } else {
    }
    return
  }
  func.func @transform_0(%arg0: i32, %arg1: i32, %arg2: i32) -> (i32, i32, i32) {
    %c0_i32 = arith.constant 0 : i32
    %c0_i32_0 = arith.constant 0 : i32
    return %arg0, %arg1, %c0_i32 : i32, i32, i32
  }
  func.func @transform_1(%arg0: i32, %arg1: i32, %arg2: i32) -> (i32, i32, i32) {
    %c0_i32 = arith.constant 0 : i32
    %c0_i32_0 = arith.constant 0 : i32
    return %arg0, %arg2, %c0_i32 : i32, i32, i32
  }
  func.func @transform_2(%arg0: i32, %arg1: i32, %arg2: i32) -> (i32, i32) {
    %c0_i32 = arith.constant 0 : i32
    %c0_i32_0 = arith.constant 0 : i32
    %c0_i32_1 = arith.constant 0 : i32
    return %c0_i32, %c0_i32_0 : i32, i32
  }
  func.func @transform_3(%arg0: i32, %arg1: i32, %arg2: i32) -> (i32, i32) {
    %c0_i32 = arith.constant 0 : i32
    %c0_i32_0 = arith.constant 0 : i32
    %c0_i32_1 = arith.constant 0 : i32
    return %c0_i32, %c0_i32_0 : i32, i32
  }
  func.func @transform_4(%arg0: i32, %arg1: i32, %arg2: i32) -> (i32, i32, i32) {
    %c0_i32 = arith.constant 0 : i32
    %c0_i32_0 = arith.constant 0 : i32
    return %arg0, %arg1, %c0_i32 : i32, i32, i32
  }
}

</mosaic_0001>

<bundles_post_ra>
// kernel: tpu_custom_call.1
= control target key start
LH: loop header
LB: loop body
LE: loop exit
PB: predicated region body
PF: predicated region fallthrough
CT: control target
= control target key end

     0   :  { %9 = vsyncpa [#allocation6], 0  ;;  %s1252_s0 = inlined_call_operand.vmem [shape: f32[2,8,16], index: 0, kind: input, shape index: {}]   ;;  %s1253_s1 = inlined_call_operand.vmem [shape: f32[2,128,32], index: 1, kind: input, shape index: {}]   ;;  %s1254_s2 = inlined_call_operand.vmem [shape: f32[32,16], index: 2, kind: input, shape index: {}]   ;;  %s1255_s3 = inlined_call_operand.vmem [shape: f32[32,16], index: 3, kind: input, shape index: {}]   ;;  %s1256_s4 = inlined_call_operand.hbm [shape: f32[2,8,16], index: 4, kind: output, shape index: {}]  }
   0x1   :  { %11 = vsyncpa [#allocation6 + $0x1], 0  ;;  %s986_s15 = smov 0   ;;  %s988_s16 = smov 0  }
   0x2   :  { %s990_s17 = smov 0   ;;  %s992_s18 = smov 0  }
   0x3   :  { %s994_s19 = smov 0   ;;  %s996_s20 = smov 0  }
   0x4 LB: > { %s740_s21 = sadd.s32 4294967295, %s956_s20   ;;  %s741_s22 = sadd.s32 4294967294, %s956_s20   ;;  %s956_s20 = sphi %s996_s20, %s17_s20   ;;  %s952_s19 = sphi %s994_s19, %s1263_s19   ;;  %s948_s18 = sphi %s992_s18, %s1262_s18   ;;  %s944_s17 = sphi %s990_s17, %s1261_s17   ;;  %s940_s16 = sphi %s988_s16, %s1260_s16   ;;  %s936_s15 = sphi %s986_s15, %s1259_s15  }
   0x5   : > { %s36_s23 = sadd.s32 1, %s952_s19  ;;  %s143_s24 = sadd.s32 1, %s944_s17 }
   0x6   : > { %p38_p0 = scmp.ge.s32.totalorder %s36_s23, 2  ;;  %p153_p1 = scmp.ne.s32.totalorder %s944_s17, %s940_s16 }
   0x7   : > { %p154_p2 = scmp.eq.s32.totalorder %s740_s21, 1  ;;  %p159_p3 = scmp.ne.s32.totalorder %s940_s16, %s936_s15 }
   0x8   : > { %s1265_s23 = smov (%p38_p0, %s36_s23), 0  ;;  %p160_p5 = scmp.eq.s32.totalorder %s741_s22, 1 }
   0x9   : > { %p1026_p4 = por %p154_p2, %p153_p1  ;;  %s138_s26 = ssub.s32 %s952_s19, %s1265_s23 }
   0xa   : > { %p744_p6 = scmp.ge.s32.totalorder %s956_s20, 1  ;;  %p141_p7 = scmp.eq.s32.totalorder %s138_s26, 0 }
   0xb   : > { %p1033_p8 = por %p160_p5, %p159_p3  ;;  %p207_p9 = scmp.lt.s32.totalorder %s956_s20, 3 }
   0xc   : > { %s1039_s28 = scalar_select %p141_p7, %s944_s17, %s143_s24  }
   0xd   : > { %p208_p10 = pnand %p744_p6, %p207_p9 }
   0xe   : > { %p244_p11 = scmp.lt.s32.totalorder (!%p208_p10), %s948_s18, 1  ;;  %s799_s14 = sshll.u32 (!%p208_p10), %s948_s18, 3 }
   0xf   : > { %211 = sbr.rel (%p208_p10) target bundleno = 893 (0x37d), region = 36  ;;  %s643_s24 = scalar_lea.hbm (!%p208_p10), %s1256_s4, %s799_s14 }
  0x10   : > { %s898_s10 = scalar_lea.hbm (!%p208_p10), %s1256_s4, 16 }
  0x14   : > { %v289_v0 = vld [vmem:[%s1254_s2 + $0x18] sm:$0xff]  ;;  %v288_v1 = vld [vmem:[%s1254_s2 + $0x10] sm:$0xff]  ;;  %v287_v2 = vld [vmem:[%s1254_s2 + $0x8] sm:$0xff]  ;;  %s1052_s9 = scalar_select %p244_p11, %s948_s18, 1  ;;  %vm290_vm0 = vcmask 261120   ;;  %vm268_vm1 = vcmask 130048   ;;  %v546_v41 = vlaneseq }
  0x15   : > { %351 = vmatpush.msra.mxu0 %v289_v0  ;;  %803 = vmatpush.msra.mxu3 %v289_v0  ;;  %v286_v3 = vld [vmem:[%s1254_s2] sm:$0xff]  ;;  %v407_v36 = vld [vmem:[%s1255_s3 + $0x18] sm:$0xff]  ;;  %v406_v37 = vld [vmem:[%s1255_s3 + $0x10] sm:$0xff]  ;;  %vm265_vm3 = vcmask 7168   ;;  %v958_v45 = vmov -1e+30  }
  0x16   : > { %s802_s12 = sshll.u32 %s1052_s9, 7  ;;  %420 = vmatpush.msra.mxu1 %v407_v36  ;;  %s746_s30 = sshll.u32 %s1052_s9, 3  ;;  %v405_v39 = vld [vmem:[%s1255_s3 + $0x8] sm:$0xff]  ;;  %v404_v40 = vld [vmem:[%s1255_s3] sm:$0xff]  ;;  %v547_v42 = vand.u32 127, %v546_v41  ;;  %266 = vst.msk [vmem:[#allocation2] sm:$0xff] %vm265_vm3, %v958_v45 }
  0x17   : > { %352 = vmatpush.msra.mxu0 %v288_v1  ;;  %804 = vmatpush.msra.mxu3 %v288_v1  ;;  %s1061_s21 = scalar_lea.vmem %s1253_s1, %s802_s12  ;;  %s250_s7 = scalar_lea.vmem %s1252_s0, %s746_s30  ;;  %v959_v46 = vmov 0   ;;  %v960_v47 = vmov 0.0  }
  0x18   : > { %v1064_v4 = vld [vmem:[%s1061_s21] sm:$0xff]  ;;  %v1067_v5 = vld [vmem:[%s1061_s21 + $0x58] sm:$0xff]  ;;  %v1074_v6 = vld [vmem:[%s1061_s21 + $0x8] sm:$0xff]  ;;  %421 = vmatpush.msra.mxu1 %v406_v37  ;;  %vm551_vm2 = vcmp.lt.s32.totalorder %v547_v42, 8  ;;  %869 = vset.pattern.permute.xlu0 %v959_v46  ;;  %267 = vst.msk [vmem:[#allocation3] sm:$0xff] %vm265_vm3, %v960_v47  ;;  %s241_s9 = sand.u32 1, %s940_s16  }
  0x19   : > { %353 = vmatpush.msra.mxu0 %v287_v2  ;;  %805 = vmatpush.msra.mxu3 %v287_v2  ;;  %v1077_v7 = vld [vmem:[%s1061_s21 + $0x60] sm:$0xff]  ;;  %v1084_v8 = vld [vmem:[%s1061_s21 + $0x10] sm:$0xff]  ;;  %v1087_v9 = vld [vmem:[%s1061_s21 + $0x68] sm:$0xff]  ;;  %269 = vst.msk [vmem:[#allocation4] sm:$0xff] %vm268_vm1, %v960_v47  ;;  %s745_s13 = sshll.u32 %s241_s9, 3  ;;  %s647_s30 = sshll.u32 %s643_s24, 4  ;;  %s648_s30 = int_to_ptr.hbm [resolvable:$true] %s647_s30 }
  0x1a   : > { %v1094_v10 = vld [vmem:[%s1061_s21 + $0x18] sm:$0xff]  ;;  %v1097_v11 = vld [vmem:[%s1061_s21 + $0x70] sm:$0xff]  ;;  %v1104_v12 = vld [vmem:[%s1061_s21 + $0x20] sm:$0xff]  ;;  %422 = vmatpush.msra.mxu1 %v405_v39  ;;  %870 = vset.pattern.permute.xlu1 %v959_v46  ;;  %s243_s26 = scalar_lea.vmem [#allocation5], %s745_s13  ;;  %s632_s5 = scalar_lea.sflag [#allocation6], %s241_s9 }
  0x1b   : > { %354 = vmatpush.msra.mxu0 %v286_v3  ;;  %806 = vmatpush.msra.mxu3 %v286_v3  ;;  %v1107_v13 = vld [vmem:[%s1061_s21 + $0x78] sm:$0xff]  ;;  %v1114_v14 = vld [vmem:[%s1061_s21 + $0x28] sm:$0xff]  ;;  %v1119_v15 = vld [vmem:[%s1061_s21 + $0x30] sm:$0xff]  ;;  %s645_s29 = sshll.u32 %s243_s26, 4  ;;  %s892_s6 = sshra.s32 %s648_s30, 4  ;;  %s646_s29 = int_to_ptr.vmem [resolvable:$true] %s645_s29  ;;  %s893_s6 = int_to_ptr.hbm [resolvable:$true] %s892_s6 }
  0x1c   : > { %749 = vmatmul.msk.f32.vlgmr.msra.gmra.mxu0 %vm290_vm0, %v1064_v4  ;;  %760 = vmatmul.msk.f32.vlgmr.msra.gmra.mxu3 %vm290_vm0, %v1067_v5  ;;  %v1124_v16 = vld [vmem:[%s1061_s21 + $0x38] sm:$0xff]  ;;  %v1129_v17 = vld [vmem:[%s1061_s21 + $0x40] sm:$0xff]  ;;  %v1134_v18 = vld [vmem:[%s1061_s21 + $0x48] sm:$0xff]  ;;  %p899_p1 = scmp.lt.s32.totalorder %s893_s6, %s1256_s4 }
  0x1d   : > { %v1139_v19 = vld [vmem:[%s1061_s21 + $0x50] sm:$0xff]  ;;  %807 = vmatpush.msrb.mxu3 %v407_v36  ;;  %v473_v38 = vld [vmem:[%s250_s7] sm:$0xff]  ;;  %423 = vmatpush.msra.mxu1 %v404_v40  ;;  %s894_s7 = scalar_lea.hbm %s893_s6, 8 }
  0x1e   : > { %765 = vmatmul.msk.f32.vlgmr.msra.gmra.mxu1 %vm290_vm0, %v1064_v4  ;;  %871 = vset.pattern.permute.xlu2 %v959_v46  ;;  %v553_v53 = vld [vmem:[#allocation2] sm:$0xff]  ;;  %p895_p12 = scmp.ne.s32.totalorder %s893_s6, %s894_s7  ;;  %p900_p2 = scmp.lt.s32.totalorder %s898_s10, %s894_s7 }
  0x1f   : > { %808 = vmatpush.msrb.mxu3 %v406_v37 }
  0x20   : > { %p896_p13 = pnand %p895_p12, %p1026_p4  ;;  %p901_p3 = por %p900_p2, %p899_p1 }
  0x21   : > { %809 = vmatpush.msrb.mxu3 %v405_v39 }
  0x22   : > { %p897_p0 = pneg %p896_p13 }
  0x23   : > { %810 = vmatpush.msrb.mxu3 %v404_v40 }
  0x24   : > { %750 = vmatmul.msk.f32.gmra.mxu0 %vm290_vm0, %v1074_v6  ;;  %761 = vmatmul.msk.f32.gmra.mxu3 %vm290_vm0, %v1077_v7  ;;  %p902_p5 = pnand %p901_p3, %p897_p0 }
  0x26   : > { %766 = vmatmul.msk.f32.gmra.mxu1 %vm290_vm0, %v1074_v6 }
  0x2c   : > { %751 = vmatmul.msk.f32.gmra.mxu0 %vm290_vm0, %v1084_v8  ;;  %762 = vmatmul.msk.f32.gmra.mxu3 %vm290_vm0, %v1087_v9 }
  0x2e   : > { %767 = vmatmul.msk.f32.gmra.mxu1 %vm290_vm0, %v1084_v8 }
  0x34   : > { %752 = vmatmul.msk.f32.gmra.mxu0 %vm290_vm0, %v1094_v10  ;;  %763 = vmatmul.msk.f32.gmra.mxu3 %vm290_vm0, %v1097_v11 }
  0x36   : > { %768 = vmatmul.msk.f32.gmra.mxu1 %vm290_vm0, %v1094_v10  ;;  %v568_v10 = vld [vmem:[#allocation3] sm:$0xff] }
  0x3c   : > { %753 = vmatmul.msk.f32.gmra.mxu0 %vm290_vm0, %v1104_v12  ;;  %764 = vmatmul.msk.f32.gmra.mxu3 %vm290_vm0, %v1107_v13 }
  0x3e   : > { %769 = vmatmul.msk.f32.gmra.mxu1 %vm290_vm0, %v1104_v12 }
  0x44   : > { %754 = vmatmul.msk.f32.gmra.mxu0 %vm290_vm0, %v1114_v14  ;;  %776 = vmatmul.msk.f32.vlgmr.msrb.gmra.mxu3 %vm290_vm0, %v1067_v5 }
  0x46   : > { %770 = vmatmul.msk.f32.gmra.mxu1 %vm290_vm0, %v1114_v14 }
  0x4c   : > { %755 = vmatmul.msk.f32.gmra.mxu0 %vm290_vm0, %v1119_v15  ;;  %777 = vmatmul.msk.f32.gmra.mxu3 %vm290_vm0, %v1077_v7 }
  0x4e   : > { %771 = vmatmul.msk.f32.gmra.mxu1 %vm290_vm0, %v1119_v15 }
  0x54   : > { %756 = vmatmul.msk.f32.gmra.mxu0 %vm290_vm0, %v1124_v16  ;;  %778 = vmatmul.msk.f32.gmra.mxu3 %vm290_vm0, %v1087_v9 }
  0x56   : > { %772 = vmatmul.msk.f32.gmra.mxu1 %vm290_vm0, %v1124_v16 }
  0x5c   : > { %757 = vmatmul.msk.f32.gmra.mxu0 %vm290_vm0, %v1129_v17  ;;  %779 = vmatmul.msk.f32.gmra.mxu3 %vm290_vm0, %v1097_v11 }
  0x5e   : > { %773 = vmatmul.msk.f32.gmra.mxu1 %vm290_vm0, %v1129_v17 }
  0x64   : > { %758 = vmatmul.msk.f32.gmra.mxu0 %vm290_vm0, %v1134_v18  ;;  %780 = vmatmul.msk.f32.gmra.mxu3 %vm290_vm0, %v1107_v13 }
  0x66   : > { %774 = vmatmul.msk.f32.gmra.mxu1 %vm290_vm0, %v1134_v18 }
  0x6c   : > { %759 = vmatmul.msk.f32.gmra.mxu0 %vm290_vm0, %v1139_v19 }
  0x6e   : > { %775 = vmatmul.msk.f32.gmra.mxu1 %vm290_vm0, %v1139_v19  ;;  %v575_v19 = vld [vmem:[#allocation4] sm:$0xff] }
  0x99   : > { %v356_v20 = vpop.f32.mrf.mxu0 }
  0x9b   : > { %v425_v48 = vpop.f32.mrf.mxu1 }
  0x9f   : > { %v389_v21 = vpop.f32.mrf.mxu3 }
  0xa1   : > { %v359_v22 = vpop.f32.mrf.mxu0 }
  0xa3   : > { %v428_v50 = vpop.f32.mrf.mxu1 }
  0xa7   : > { %v392_v23 = vpop.f32.mrf.mxu3 }
  0xa9   : > { %v362_v24 = vpop.f32.mrf.mxu0 }
  0xab   : > { %v431_v52 = vpop.f32.mrf.mxu1 }
  0xaf   : > { %v395_v25 = vpop.f32.mrf.mxu3 }
  0xb1   : > { %v365_v26 = vpop.f32.mrf.mxu0 }
  0xb3   : > { %v434_v58 = vpop.f32.mrf.mxu1 }
  0xb7   : > { %v398_v27 = vpop.f32.mrf.mxu3 }
  0xb9   : > { %v368_v28 = vpop.f32.mrf.mxu0 }
  0xbb   : > { %v437_v60 = vpop.f32.mrf.mxu1 }
  0xbf   : > { %v401_v29 = vpop.f32.mrf.mxu3 }
  0xc0   : > { %781 = vmatpush.xpose.msk.msra.mxu2 %vm268_vm1, %v401_v29 }
  0xc1   : > { %v371_v30 = vpop.f32.mrf.mxu0 }
  0xc3   : > { %v440_v62 = vpop.f32.mrf.mxu1 }
  0xc4   : > { %782 = vmatpush.xpose.msk.msra.mxu2 %vm268_vm1, %v398_v27 }
  0xc7   : > { %v458_v49 = vpop.f32.mrf.mxu3 }
  0xc8   : > { %783 = vmatpush.xpose.msk.msra.mxu2 %vm268_vm1, %v395_v25 }
  0xc9   : > { %v374_v31 = vpop.f32.mrf.mxu0 }
  0xcb   : > { %v443_v63 = vpop.f32.mrf.mxu1 }
  0xcc   : > { %784 = vmatpush.xpose.msk.msra.mxu2 %vm268_vm1, %v392_v23 }
  0xcf   : > { %v461_v51 = vpop.f32.mrf.mxu3 }
  0xd0   : > { %785 = vmatpush.xpose.msk.msra.mxu2 %vm268_vm1, %v389_v21 }
  0xd1   : > { %v377_v32 = vpop.f32.mrf.mxu0 }
  0xd3   : > { %v446_v0 = vpop.f32.mrf.mxu1 }
  0xd7   : > { %v464_v56 = vpop.f32.mrf.mxu3 }
  0xd9   : > { %v380_v33 = vpop.f32.mrf.mxu0 }
  0xdb   : > { %v449_v1 = vpop.f32.mrf.mxu1 }
  0xdf   : > { %v467_v59 = vpop.f32.mrf.mxu3 }
  0xe1   : > { %v383_v34 = vpop.f32.mrf.mxu0 }
  0xe3   : > { %v452_v2 = vpop.f32.mrf.mxu1 }
  0xe7   : > { %v470_v61 = vpop.f32.mrf.mxu3 }
  0xe8   : > { %582 = vmatpush.msra.mxu3 %v470_v61 }
  0xe9   : > { %v386_v35 = vpop.f32.mrf.mxu0 }
  0xea   : > { %786 = vmatpush.xpose.msk.msra.mxu2 %vm268_vm1, %v386_v35  ;;  %583 = vmatpush.msra.mxu3 %v467_v59 }
  0xeb   : > { %v455_v3 = vpop.f32.mrf.mxu1 }
  0xec   : > { %584 = vmatpush.msra.mxu3 %v464_v56 }
  0xee   : > { %787 = vmatpush.xpose.msk.msra.mxu2 %vm268_vm1, %v383_v34  ;;  %585 = vmatpush.msra.mxu3 %v461_v51 }
  0xf0   : > { %586 = vmatpush.msra.mxu3 %v458_v49 }
  0xf2   : > { %788 = vmatpush.xpose.msk.msra.mxu2 %vm268_vm1, %v380_v33  ;;  %587 = vmatpush.msra.mxu3 %v455_v3 }
  0xf4   : > { %588 = vmatpush.msra.mxu3 %v452_v2 }
  0xf6   : > { %789 = vmatpush.xpose.msk.msra.mxu2 %vm268_vm1, %v377_v32  ;;  %589 = vmatpush.msra.mxu3 %v449_v1 }
  0xf8   : > { %590 = vmatpush.msra.mxu3 %v446_v0 }
  0xfa   : > { %790 = vmatpush.xpose.msk.msra.mxu2 %vm268_vm1, %v374_v31  ;;  %591 = vmatpush.msra.mxu3 %v443_v63 }
  0xfc   : > { %592 = vmatpush.msra.mxu3 %v440_v62 }
  0xfe   : > { %791 = vmatpush.xpose.msk.msra.mxu2 %vm268_vm1, %v371_v30  ;;  %593 = vmatpush.msra.mxu3 %v437_v60 }
 0x100   : > { %594 = vmatpush.msra.mxu3 %v434_v58 }
 0x102   : > { %792 = vmatpush.xpose.msk.msra.mxu2 %vm268_vm1, %v368_v28  ;;  %595 = vmatpush.msra.mxu3 %v431_v52 }
 0x104   : > { %596 = vmatpush.msra.mxu3 %v428_v50 }
 0x106   : > { %793 = vmatpush.xpose.msk.msra.mxu2 %vm268_vm1, %v365_v26  ;;  %597 = vmatpush.msra.mxu3 %v425_v48 }
 0x10a   : > { %794 = vmatpush.xpose.msk.msra.mxu2 %vm268_vm1, %v362_v24 }
 0x10e   : > { %795 = vmatpush.xpose.msk.msra.mxu2 %vm268_vm1, %v359_v22 }
 0x112   : > { %796 = vmatpush.xpose.msk.msra.mxu2 %vm268_vm1, %v356_v20 }
 0x115   : > { %797 = vmatmul.msk.f32.vlgmr.msra.gmra.mxu2 %vm268_vm1, %v473_v38 }
 0x198   : > { %v543_v43 = vpop.f32.mrf.mxu2 }
 0x199   : > { %v552_v44 = vsel %vm551_vm2, %v543_v43, -1e+30 }
 0x19a   : > { %554 = vmax.xlane.f32.xlu0 %v552_v44 }
 0x20d   : > { %v555_v54 = vpop.xlane.xlu0 %554 }
 0x20e   : > { %v556_v55 = vmax.f32 %v553_v53, %v555_v54 }
 0x210   : > { %v557_v57 = vsub.f32 %v553_v53, %v556_v55  ;;  %604 = vst.msk [vmem:[#allocation2] sm:$0xff] %vm265_vm3, %v556_v55  ;;  %562 = vperm.xlu0 %869, %v556_v55  }
 0x212   : > { %v558_v8 = vmul.f32 1.442695, %v557_v57 }
 0x282   : > { %v563_v4 = vpop.permute.xlu0 %562 }
 0x283   : > { %v565_v5 = vsub.f32 %v552_v44, %v563_v4 }
 0x285   : > { %v566_v6 = vmul.f32 1.442695, %v565_v5 }
 0x287   : > { %872 = vpow2.f32 %v566_v6 }
 0x288   : > { %874 = vpow2.f32 %v558_v8 }
 0x28d   : > { %v873_v7 = vpop.eup %872 }
 0x28e   : > { %570 = vadd.xlane.f32.xlu1 %v873_v7  ;;  %598 = vmatmul.f32.vlgmr.msra.gmra.mxu3 %v873_v7  ;;  %v875_v9 = vpop.eup %874 }
 0x28f   : > { %v569_v11 = vmul.f32 %v875_v9, %v568_v10 }
 0x2a7   : > { %578 = vperm.xlu1 %870, %v875_v9  }
 0x301   : > { %v571_v12 = vpop.xlane.xlu1 %570 }
 0x302   : > { %v572_v13 = vadd.f32 %v571_v12, %v569_v11 }
 0x304   : > { %574 = vst.msk [vmem:[#allocation3] sm:$0xff] %vm265_vm3, %v572_v13 }
 0x30b   : > { %v608_v14 = vld [vmem:[#allocation3] sm:$0xff] }
 0x30c   : > { %876 = vrcp.f32 %v608_v14  ;;  %v620_v18 = vand.u32 2147483648, %v608_v14  ;;  %v618_v21 = vand.u32 2147483647, %v608_v14  ;;  %vm614_vm5 = vweird.f32 %v608_v14 }
 0x30e   : > { %v621_v25 = vor.u32 1.1754944e-38, %v620_v18  ;;  %vm619_vm7 = vcmp.eq.f32.partialorder %v618_v21, 8.507059e+37 }
 0x311   : > { %v599_v26 = vpop.f32.mrf.mxu3 }
 0x312   : > { %v877_v15 = vpop.eup %876 }
 0x313   : > { %v610_v16 = vmul.f32 %v877_v15, %v608_v14  ;;  %vm615_vm4 = vweird.f32 %v877_v15 }
 0x314   : > { %vm616_vm6 = vmor %vm614_vm5, %vm615_vm4 }
 0x315   : > { %v611_v17 = vsub.f32 1.0, %v610_v16 }
 0x317   : > { %v612_v20 = vmul.f32 %v877_v15, %v611_v17 }
 0x319   : > { %v579_v22 = vpop.permute.xlu1 %578  ;;  %v613_v23 = vadd.f32 %v877_v15, %v612_v20 }
 0x31a   : > { %v581_v24 = vmul.f32 %v579_v22, %v575_v19 }
 0x31b   : > { %v617_v27 = vsel %vm616_vm6, %v877_v15, %v613_v23 }
 0x31c   : > { %v602_v28 = vadd.f32 %v599_v26, %v581_v24  ;;  %v622_v29 = vsel %vm619_vm7, %v621_v25, %v617_v27 }
 0x31d   : > { %626 = vperm.xlu2 %871, %v622_v29  }
 0x31e   : > { %603 = vst.msk [vmem:[#allocation4] sm:$0xff] %vm268_vm1, %v602_v28 }
 0x325   : > { %v623_v30 = vld [vmem:[#allocation4] sm:$0xff] }
 0x377   : > { %v627_v31 = vpop.permute.xlu2 %626 }
 0x378   : > { %v629_v32 = vmul.f32 %v627_v31, %v623_v30 }
 0x37a   : > { %630 = vst.msk [vmem:[%s243_s26] sm:$0xff] %vm268_vm1, %v629_v32 }
 0x37b   : > { %905 = shalt.err (!%p902_p5)
}
 0x37c   : > { %811 = dma.vmem_to_hbm [thread:$0]  (%p1026_p4), %s646_s29, 128, %s648_s30, %s632_s5  }
 0x37d PF: > { %p817_p6 = scmp.ge.s32.totalorder %s956_s20, 2  ;;  %s659_s9 = sand.u32 1, %s936_s15  }
 0x37e   : > { %s660_s13 = scalar_lea.sflag [#allocation6], %s659_s9 }
 0x37f   : > { %p814_p7 = pnand %p817_p6, %p1033_p8 }
 0x381   : > { %p815_p9 = pneg %p814_p7 }
 0x383   : > { %931 = dma.done.wait (%p815_p9), %s660_s13, 128  }
 0x384   : > { %933 = vsyncadd (%p815_p9), %s660_s13, 4294967168  ;;  %s17_s20 = sadd.s32 1, %s956_s20   ;;  %s1259_s15 = smov %s940_s16 }
 0x385   : > { %p14_p10 = scmp.ge.s32.totalorder %s17_s20, 4   ;;  %s1260_s16 = smov %s944_s17 }
 0x386   : > { %s1261_s17 = smov %s1039_s28  ;;  %s1262_s18 = smov %s952_s19 }
 0x387   : > { %s1263_s19 = smov %s1265_s23  ;;  %16 = sbr.rel (!%p14_p10) target bundleno = 4 (0x4), region = 82 }
 0x38c   :  { %666 = vsyncpa [#allocation6], 1 }
 0x38d   :  { %668 = vsyncpa [#allocation6 + $0x1], 1 }

</bundles_post_ra>
